<compile_context>
chip_gen: v7x
topology: tpu7x:2x2x1
jax: 0.10.0
libtpu: 0.0.40
codegen_flags: <defaults>
</compile_context>

<pallas_src>
import functools
import math

import jax
import jax.numpy as jnp
from jax import lax
from jax.experimental import pallas as pl
from jax.experimental.pallas import tpu as pltpu


def _round_up(x, m):
    return ((x + m - 1) // m) * m


# ============================================================================
# Fused MHA kernel: projections + per-head attention in one pass per batch row
# ============================================================================
def _fused_mha_kernel(*refs, n_heads, d_k, d_v, scale, has_mask):
    if has_mask:
        (q_ref, k_ref, v_ref, wq_ref, bq_ref, wk_ref, bk_ref, wv_ref, bv_ref,
         m_ref, ctx_ref, attn_ref) = refs
    else:
        (q_ref, k_ref, v_ref, wq_ref, bq_ref, wk_ref, bk_ref, wv_ref, bv_ref,
         ctx_ref, attn_ref) = refs
        m_ref = None

    f32 = jnp.float32
    q = q_ref[0].astype(f32)          # (sq, d_model)
    k = k_ref[0].astype(f32)          # (sk, d_model)
    v = v_ref[0].astype(f32)          # (sk, d_model)

    # Linear projections (bias added once, in f32).
    q_p = jnp.dot(q, wq_ref[...].astype(f32),
                  preferred_element_type=f32) + bq_ref[...].astype(f32)
    k_p = jnp.dot(k, wk_ref[...].astype(f32),
                  preferred_element_type=f32) + bk_ref[...].astype(f32)
    v_p = jnp.dot(v, wv_ref[...].astype(f32),
                  preferred_element_type=f32) + bv_ref[...].astype(f32)

    mask = None
    if has_mask:
        mask = m_ref[0] > 0.0         # (sq, sk); True == masked_fill(-1e9)

    ctx_cols = []
    # n_heads is a static Python int -> unrolled, MXU-friendly tiny matmuls.
    for j in range(n_heads):
        q_h = q_p[:, j * d_k:(j + 1) * d_k]          # (sq, d_k)
        k_h = k_p[:, j * d_k:(j + 1) * d_k]          # (sk, d_k)
        v_h = v_p[:, j * d_v:(j + 1) * d_v]          # (sk, d_v)

        # scores = q_h @ k_h^T (contraction over d_k, no explicit transpose)
        s = lax.dot_general(q_h, k_h, (((1,), (1,)), ((), ())),
                            preferred_element_type=f32) * scale
        if mask is not None:
            s = jnp.where(mask, -1e9, s)

        mx = jnp.max(s, axis=-1, keepdims=True)
        e = jnp.exp(s - mx)
        attn = e / jnp.sum(e, axis=-1, keepdims=True)

        ctx_cols.append(jnp.dot(attn, v_h, preferred_element_type=f32))
        attn_ref[0, j] = attn.astype(attn_ref.dtype)

    # Single lane-dense store of the already-head-interleaved context.
    ctx_ref[0] = jnp.concatenate(ctx_cols, axis=-1).astype(ctx_ref.dtype)


def pallas_fused_mha(params, q, k, v, mask_f=None):
    """q/k/v: (b, s, d_model); mask_f: optional (b, sq, sk) float32 (>0 masked)."""
    d_k, d_v, h = params["d_k"], params["d_v"], params["n_heads"]
    b, sq, dm = q.shape
    sk = k.shape[1]
    scale = 1.0 / math.sqrt(d_k)

    bq = params["b_q"].reshape(1, h * d_k)
    bk = params["b_k"].reshape(1, h * d_k)
    bv = params["b_v"].reshape(1, h * d_v)

    in_specs = [
        pl.BlockSpec((1, sq, dm), lambda i: (i, 0, 0)),
        pl.BlockSpec((1, sk, dm), lambda i: (i, 0, 0)),
        pl.BlockSpec((1, sk, dm), lambda i: (i, 0, 0)),
        pl.BlockSpec((dm, h * d_k), lambda i: (0, 0)),     # weights stay resident
        pl.BlockSpec((1, h * d_k), lambda i: (0, 0)),
        pl.BlockSpec((dm, h * d_k), lambda i: (0, 0)),
        pl.BlockSpec((1, h * d_k), lambda i: (0, 0)),
        pl.BlockSpec((dm, h * d_v), lambda i: (0, 0)),
        pl.BlockSpec((1, h * d_v), lambda i: (0, 0)),
    ]
    args = [q, k, v, params["w_q"], bq, params["w_k"], bk, params["w_v"], bv]
    if mask_f is not None:
        in_specs.append(pl.BlockSpec((1, sq, sk), lambda i: (i, 0, 0)))
        args.append(mask_f)

    kernel = functools.partial(_fused_mha_kernel, n_heads=h, d_k=d_k, d_v=d_v,
                               scale=scale, has_mask=mask_f is not None)

    cost = pl.CostEstimate(
        flops=2 * b * (sq * dm * h * d_k + sk * dm * h * d_k + sk * dm * h * d_v)
              + 2 * b * h * sq * sk * (d_k + d_v),
        transcendentals=b * h * sq * sk,
        bytes_accessed=4 * (b * (sq * dm + 2 * sk * dm + sq * h * d_v + h * sq * sk)
                            + dm * h * (2 * d_k + d_v)),
    )

    ctx, attn = pl.pallas_call(
        kernel,
        out_shape=(
            jax.ShapeDtypeStruct((b, sq, h * d_v), q.dtype),
            jax.ShapeDtypeStruct((b, h, sq, sk), jnp.float32),
        ),
        grid_spec=pltpu.PrefetchScalarGridSpec(
            num_scalar_prefetch=0,
            grid=(b,),
            in_specs=in_specs,
            out_specs=[
                pl.BlockSpec((1, sq, h * d_v), lambda i: (i, 0, 0)),
                pl.BlockSpec((1, h, sq, sk), lambda i: (i, 0, 0, 0)),
            ],
        ),
        compiler_params=pltpu.CompilerParams(dimension_semantics=("parallel",)),
        cost_estimate=cost,
    )(*args)
    return ctx, attn


def _fused_vmem_bytes(b, sq, sk, dm, h, d_k, d_v, has_mask):
    """Rough per-step VMEM estimate (f32) for the fused kernel."""
    per_step = sq * dm + 2 * sk * dm + sq * h * d_v + h * sq * sk \
        + (sq * sk if has_mask else 0)
    weights = dm * h * (2 * d_k + d_v) + h * (2 * d_k + d_v)
    temps = sq * h * d_k + sk * h * d_k + sk * h * d_v + 3 * sq * sk + sq * h * d_v
    return 4 * (2 * per_step + 2 * weights + temps)


# ============================================================================
# Fallback path (large shapes): tiled linear + per-(batch*head) SDPA
# ============================================================================
def _linear_kernel(x_ref, w_ref, b_ref, o_ref, acc_ref):
    @pl.when(pl.program_id(2) == 0)
    def _init():
        acc_ref[...] = jnp.zeros_like(acc_ref)

    acc_ref[...] += jnp.dot(x_ref[...], w_ref[...],
                            preferred_element_type=jnp.float32)

    @pl.when(pl.program_id(2) == pl.num_programs(2) - 1)
    def _epilogue():
        o_ref[...] = (acc_ref[...]
                      + b_ref[...].astype(jnp.float32)).astype(o_ref.dtype)


def pallas_linear(x, w_io, bias, *, tm_max=256, tn_max=256, tk_max=512):
    """x: (..., K); w_io: (K, N) pre-transposed PyTorch weight; bias: (N,)."""
    K, N = w_io.shape
    lead = x.shape[:-1]
    x2d = x.reshape(-1, K)
    M = x2d.shape[0]

    tm = min(tm_max, _round_up(M, 8))
    tn = min(tn_max, _round_up(N, 128))
    tk = min(tk_max, _round_up(K, 128))
    Mp, Np, Kp = _round_up(M, tm), _round_up(N, tn), _round_up(K, tk)

    if (Mp, Kp) != (M, K):
        x2d = jnp.pad(x2d, ((0, Mp - M), (0, Kp - K)))
    w_p = w_io if (Kp, Np) == (K, N) else jnp.pad(w_io, ((0, Kp - K), (0, Np - N)))
    b_p = bias.reshape(1, N)
    if Np != N:
        b_p = jnp.pad(b_p, ((0, 0), (0, Np - N)))

    grid = (Mp // tm, Np // tn, Kp // tk)
    itm = x2d.dtype.itemsize
    cost = pl.CostEstimate(
        flops=2 * Mp * Np * Kp,
        transcendentals=0,
        bytes_accessed=itm * (Mp * Kp + Kp * Np + Np + Mp * Np),
    )

    out = pl.pallas_call(
        _linear_kernel,
        out_shape=jax.ShapeDtypeStruct((Mp, Np), x.dtype),
        grid_spec=pltpu.PrefetchScalarGridSpec(
            num_scalar_prefetch=0,
            grid=grid,
            in_specs=[
                pl.BlockSpec((tm, tk), lambda i, j, k: (i, k)),
                pl.BlockSpec((tk, tn), lambda i, j, k: (k, j)),
                pl.BlockSpec((1, tn), lambda i, j, k: (0, j)),
            ],
            out_specs=pl.BlockSpec((tm, tn), lambda i, j, k: (i, j)),
            scratch_shapes=[pltpu.VMEM((tm, tn), jnp.float32)],
        ),
        compiler_params=pltpu.CompilerParams(
            dimension_semantics=("parallel", "parallel", "arbitrary")),
        cost_estimate=cost,
    )(x2d, w_p, b_p)

    out = out[:M, :N]
    return out.reshape(*lead, N)


def _sdpa_body(q, k, v, scale, mask=None):
    scores = jnp.einsum("bqd,bkd->bqk", q, k,
                        preferred_element_type=jnp.float32) * scale
    if mask is not None:
        scores = jnp.where(mask > 0.0, -1e9, scores)
    m = jnp.max(scores, axis=-1, keepdims=True)
    e = jnp.exp(scores - m)
    denom = jnp.sum(e, axis=-1, keepdims=True)
    attn = e * pl.reciprocal(denom, approx=False)
    ctx = jnp.einsum("bqk,bkd->bqd", attn, v,
                     preferred_element_type=jnp.float32)
    return ctx, attn


def _sdpa_kernel(q_ref, k_ref, v_ref, ctx_ref, attn_ref, *, scale):
    ctx, attn = _sdpa_body(q_ref[...].astype(jnp.float32),
                           k_ref[...].astype(jnp.float32),
                           v_ref[...].astype(jnp.float32), scale)
    ctx_ref[...] = ctx.astype(ctx_ref.dtype)
    attn_ref[...] = attn.astype(attn_ref.dtype)


def _sdpa_mask_kernel(q_ref, k_ref, v_ref, m_ref, ctx_ref, attn_ref, *, scale):
    ctx, attn = _sdpa_body(q_ref[...].astype(jnp.float32),
                           k_ref[...].astype(jnp.float32),
                           v_ref[...].astype(jnp.float32), scale,
                           mask=m_ref[...])
    ctx_ref[...] = ctx.astype(ctx_ref.dtype)
    attn_ref[...] = attn.astype(attn_ref.dtype)


def pallas_sdpa(q_s, k_s, v_s, d_k, mask=None):
    bh, sq, dk = q_s.shape
    _, sk, dv = v_s.shape
    scale = 1.0 / math.sqrt(d_k)

    in_specs = [
        pl.BlockSpec((1, sq, dk), lambda i: (i, 0, 0)),
        pl.BlockSpec((1, sk, dk), lambda i: (i, 0, 0)),
        pl.BlockSpec((1, sk, dv), lambda i: (i, 0, 0)),
    ]
    args = (q_s, k_s, v_s)
    kernel = functools.partial(_sdpa_kernel, scale=scale)
    if mask is not None:
        in_specs.append(pl.BlockSpec((1, sq, sk), lambda i: (i, 0, 0)))
        args = args + (mask,)
        kernel = functools.partial(_sdpa_mask_kernel, scale=scale)

    itm = q_s.dtype.itemsize
    cost = pl.CostEstimate(
        flops=2 * bh * sq * sk * (dk + dv),
        transcendentals=bh * sq * sk,
        bytes_accessed=itm * bh * (sq * dk + sk * dk + sk * dv + sq * dv)
                       + 4 * bh * sq * sk,
    )

    ctx, attn = pl.pallas_call(
        kernel,
        out_shape=(
            jax.ShapeDtypeStruct((bh, sq, dv), q_s.dtype),
            jax.ShapeDtypeStruct((bh, sq, sk), jnp.float32),
        ),
        grid_spec=pltpu.PrefetchScalarGridSpec(
            num_scalar_prefetch=0,
            grid=(bh,),
            in_specs=in_specs,
            out_specs=[
                pl.BlockSpec((1, sq, dv), lambda i: (i, 0, 0)),
                pl.BlockSpec((1, sq, sk), lambda i: (i, 0, 0)),
            ],
        ),
        compiler_params=pltpu.CompilerParams(dimension_semantics=("parallel",)),
        cost_estimate=cost,
    )(*args)
    return ctx, attn


# ============================================================================
# Module: parameters + forward
# ============================================================================
def init_mha_params(key, d_k, d_v, d_model, n_heads, dtype=jnp.float32):
    def xavier(k, fan_in, fan_out):
        # xavier_normal_: std = sqrt(2 / (fan_in + fan_out)); stored
        # pre-transposed as (in, out) so kernels never transpose weights.
        std = math.sqrt(2.0 / (fan_in + fan_out))
        return std * jax.random.normal(k, (fan_in, fan_out), dtype=dtype)

    kq, kk, kv = jax.random.split(key, 3)
    return {
        "d_k": d_k, "d_v": d_v, "d_model": d_model, "n_heads": n_heads,
        "w_q": xavier(kq, d_model, d_k * n_heads),
        "b_q": jnp.zeros((d_k * n_heads,), dtype),
        "w_k": xavier(kk, d_model, d_k * n_heads),
        "b_k": jnp.zeros((d_k * n_heads,), dtype),
        "w_v": xavier(kv, d_model, d_v * n_heads),
        "b_v": jnp.zeros((d_v * n_heads,), dtype),
    }


def multi_head_attention(params, q, k, v, attn_mask=None, force_path=None):
    """Forward of `_MultiHeadAttention`; returns (context, attn).

    q, k, v: (batch, seq, d_model). attn_mask: optional bool (batch, sq, sk);
    True entries are filled with -1e9 before softmax (as in the torch module).
    """
    d_k, d_v, h = params["d_k"], params["d_v"], params["n_heads"]
    b, sq, dm = q.shape
    sk = k.shape[1]

    if force_path == "fused":
        use_fused = True
    elif force_path == "modular":
        use_fused = False
    else:
        use_fused = _fused_vmem_bytes(b, sq, sk, dm, h, d_k, d_v,
                                      attn_mask is not None) <= 24 * 1024 * 1024

    if use_fused:
        mask_f = None
        if attn_mask is not None:
            mask_f = attn_mask.astype(jnp.float32)          # (b, sq, sk)
        ctx, attn = pallas_fused_mha(params, q, k, v, mask_f)
        return ctx, attn

    # --- fallback: tiled projections + per-(batch*head) SDPA ---------------
    q_p = pallas_linear(q, params["w_q"], params["b_q"])   # (b, sq, h*d_k)
    k_p = pallas_linear(k, params["w_k"], params["b_k"])   # (b, sk, h*d_k)
    v_p = pallas_linear(v, params["w_v"], params["b_v"])   # (b, sk, h*d_v)

    # glue: split heads + move head axis forward (== .view(...).transpose(1,2))
    q_s = q_p.reshape(b, sq, h, d_k).transpose(0, 2, 1, 3).reshape(b * h, sq, d_k)
    k_s = k_p.reshape(b, sk, h, d_k).transpose(0, 2, 1, 3).reshape(b * h, sk, d_k)
    v_s = v_p.reshape(b, sk, h, d_v).transpose(0, 2, 1, 3).reshape(b * h, sk, d_v)

    mask_f = None
    if attn_mask is not None:
        mask_f = jnp.broadcast_to(attn_mask[:, None, :, :], (b, h, sq, sk))
        mask_f = mask_f.astype(jnp.float32).reshape(b * h, sq, sk)

    ctx, attn = pallas_sdpa(q_s, k_s, v_s, d_k, mask_f)

    attn = attn.reshape(b, h, sq, sk)
    context = (ctx.reshape(b, h, sq, d_v)
                  .transpose(0, 2, 1, 3)
                  .reshape(b, sq, h * d_v))
    return context, attn


def reference_mha(params, q, k, v, attn_mask=None):
    d_k, d_v, h = params["d_k"], params["d_v"], params["n_heads"]
    b, sq, _ = q.shape
    sk = k.shape[1]
    q_s = (q @ params["w_q"] + params["b_q"]).reshape(b, sq, h, d_k).transpose(0, 2, 1, 3)
    k_s = (k @ params["w_k"] + params["b_k"]).reshape(b, sk, h, d_k).transpose(0, 2, 1, 3)
    v_s = (v @ params["w_v"] + params["b_v"]).reshape(b, sk, h, d_v).transpose(0, 2, 1, 3)
    scores = jnp.einsum("bhqd,bhkd->bhqk", q_s, k_s) / math.sqrt(d_k)
    if attn_mask is not None:
        scores = jnp.where(attn_mask[:, None, :, :], -1e9, scores)
    attn = jax.nn.softmax(scores, axis=-1)
    ctx = jnp.einsum("bhqk,bhkd->bhqd", attn, v_s)
    ctx = ctx.transpose(0, 2, 1, 3).reshape(b, sq, h * d_v)
    return ctx, attn


if __name__ == "__main__":
    key = jax.random.PRNGKey(0)
    kp, kq, kk, kv = jax.random.split(key, 4)

    d_model, n_heads, d_k, d_v = 32, 4, 8, 8
    batch, seq = 2, 8

    params = init_mha_params(kp, d_k, d_v, d_model, n_heads)
    q = jax.random.normal(kq, (batch, seq, d_model), jnp.float32)
    k = jax.random.normal(kk, (batch, seq, d_model), jnp.float32)
    v = jax.random.normal(kv, (batch, seq, d_model), jnp.float32)

    # fused path, unmasked (module called with attn_mask=None)
    ctx, attn = multi_head_attention(params, q, k, v, attn_mask=None)
    jax.block_until_ready((ctx, attn))
    ctx_r, attn_r = reference_mha(params, q, k, v, None)
    assert ctx.shape == (batch, seq, n_heads * d_v)
    assert attn.shape == (batch, n_heads, seq, seq)
    assert jnp.allclose(ctx, ctx_r, atol=1e-4, rtol=1e-4)
    assert jnp.allclose(attn, attn_r, atol=1e-4, rtol=1e-4)

    # fused path, masked (True = masked with -1e9 before softmax)
    mask = jnp.broadcast_to(jnp.triu(jnp.ones((seq, seq), dtype=bool), k=1),
                            (batch, seq, seq))
    ctx_m, attn_m = multi_head_attention(params, q, k, v, attn_mask=mask)
    jax.block_until_ready((ctx_m, attn_m))
    ctx_mr, attn_mr = reference_mha(params, q, k, v, mask)
    assert jnp.allclose(ctx_m, ctx_mr, atol=1e-4, rtol=1e-4)
    assert jnp.allclose(attn_m, attn_mr, atol=1e-4, rtol=1e-4)

    # fallback (large-shape) path still works at small shapes too
    ctx_f, attn_f = multi_head_attention(params, q, k, v, attn_mask=None,
                                         force_path="modular")
    jax.block_until_ready((ctx_f, attn_f))
    assert jnp.allclose(ctx_f, ctx_r, atol=1e-4, rtol=1e-4)
    assert jnp.allclose(attn_f, attn_r, atol=1e-4, rtol=1e-4)

    print("KERNEL_OK")
</pallas_src>

<mosaic_0001>
module attributes {stable_mosaic.version = 11 : i64} {
  func.func @_fused_mha_kernel(%arg0: i32, %arg1: memref<1x8x32xf32, #tpu.memory_space<vmem>>, %arg2: memref<1x8x32xf32, #tpu.memory_space<vmem>>, %arg3: memref<1x8x32xf32, #tpu.memory_space<vmem>>, %arg4: memref<32x32xf32, #tpu.memory_space<vmem>>, %arg5: memref<1x32xf32, #tpu.memory_space<vmem>>, %arg6: memref<32x32xf32, #tpu.memory_space<vmem>>, %arg7: memref<1x32xf32, #tpu.memory_space<vmem>>, %arg8: memref<32x32xf32, #tpu.memory_space<vmem>>, %arg9: memref<1x32xf32, #tpu.memory_space<vmem>>, %arg10: memref<1x8x32xf32, #tpu.memory_space<vmem>>, %arg11: memref<1x4x8x8xf32, #tpu.memory_space<vmem>>) attributes {dimension_semantics = [#tpu.dimension_semantics<parallel>], iteration_bounds = array<i64: 2>, scalar_prefetch = 0 : i64, scratch_operands = 0 : i64, tpu.core_type = #tpu.core_type<tc>, window_params = [{transform_indices = @transform_0, window_bounds = array<i64: 1, 8, 32>}, {transform_indices = @transform_1, window_bounds = array<i64: 1, 8, 32>}, {transform_indices = @transform_2, window_bounds = array<i64: 1, 8, 32>}, {pipeline_mode = #tpu.pipeline_mode<synchronous>, transform_indices = @transform_3, window_bounds = array<i64: 32, 32>}, {pipeline_mode = #tpu.pipeline_mode<synchronous>, transform_indices = @transform_4, window_bounds = array<i64: 1, 32>}, {pipeline_mode = #tpu.pipeline_mode<synchronous>, transform_indices = @transform_5, window_bounds = array<i64: 32, 32>}, {pipeline_mode = #tpu.pipeline_mode<synchronous>, transform_indices = @transform_6, window_bounds = array<i64: 1, 32>}, {pipeline_mode = #tpu.pipeline_mode<synchronous>, transform_indices = @transform_7, window_bounds = array<i64: 32, 32>}, {pipeline_mode = #tpu.pipeline_mode<synchronous>, transform_indices = @transform_8, window_bounds = array<i64: 1, 32>}, {transform_indices = @transform_9, window_bounds = array<i64: 1, 8, 32>}, {transform_indices = @transform_10, window_bounds = array<i64: 1, 4, 8, 8>}]} {
    %c0 = arith.constant 0 : index
    %c0_0 = arith.constant 0 : index
    %c0_1 = arith.constant 0 : index
    %0 = vector.load %arg1[%c0, %c0_0, %c0_1] : memref<1x8x32xf32, #tpu.memory_space<vmem>>, vector<1x8x32xf32>
    %1 = vector.shape_cast %0 : vector<1x8x32xf32> to vector<8x32xf32>
    %c0_2 = arith.constant 0 : index
    %c0_3 = arith.constant 0 : index
    %c0_4 = arith.constant 0 : index
    %2 = vector.load %arg2[%c0_2, %c0_3, %c0_4] : memref<1x8x32xf32, #tpu.memory_space<vmem>>, vector<1x8x32xf32>
    %3 = vector.shape_cast %2 : vector<1x8x32xf32> to vector<8x32xf32>
    %c0_5 = arith.constant 0 : index
    %c0_6 = arith.constant 0 : index
    %c0_7 = arith.constant 0 : index
    %4 = vector.load %arg3[%c0_5, %c0_6, %c0_7] : memref<1x8x32xf32, #tpu.memory_space<vmem>>, vector<1x8x32xf32>
    %5 = vector.shape_cast %4 : vector<1x8x32xf32> to vector<8x32xf32>
    %c0_8 = arith.constant 0 : index
    %c0_9 = arith.constant 0 : index
    %6 = vector.load %arg4[%c0_8, %c0_9] : memref<32x32xf32, #tpu.memory_space<vmem>>, vector<32x32xf32>
    %cst = arith.constant dense<0.000000e+00> : vector<8x32xf32>
    %7 = tpu.matmul %1, %6, %cst {dimension_numbers = #tpu.dot_dimension_numbers<[1], [0], [0], [1], [0, 0, 1, 1], [], []>} : vector<8x32xf32>, vector<32x32xf32>, vector<8x32xf32> -> vector<8x32xf32>
    %c0_10 = arith.constant 0 : index
    %c0_11 = arith.constant 0 : index
    %8 = vector.load %arg5[%c0_10, %c0_11] : memref<1x32xf32, #tpu.memory_space<vmem>>, vector<1x32xf32>
    %9 = vector.broadcast %8 : vector<1x32xf32> to vector<8x32xf32>
    %10 = arith.addf %7, %9 : vector<8x32xf32>
    %c0_12 = arith.constant 0 : index
    %c0_13 = arith.constant 0 : index
    %11 = vector.load %arg6[%c0_12, %c0_13] : memref<32x32xf32, #tpu.memory_space<vmem>>, vector<32x32xf32>
    %cst_14 = arith.constant dense<0.000000e+00> : vector<8x32xf32>
    %12 = tpu.matmul %3, %11, %cst_14 {dimension_numbers = #tpu.dot_dimension_numbers<[1], [0], [0], [1], [0, 0, 1, 1], [], []>} : vector<8x32xf32>, vector<32x32xf32>, vector<8x32xf32> -> vector<8x32xf32>
    %c0_15 = arith.constant 0 : index
    %c0_16 = arith.constant 0 : index
    %13 = vector.load %arg7[%c0_15, %c0_16] : memref<1x32xf32, #tpu.memory_space<vmem>>, vector<1x32xf32>
    %14 = vector.broadcast %13 : vector<1x32xf32> to vector<8x32xf32>
    %15 = arith.addf %12, %14 : vector<8x32xf32>
    %c0_17 = arith.constant 0 : index
    %c0_18 = arith.constant 0 : index
    %16 = vector.load %arg8[%c0_17, %c0_18] : memref<32x32xf32, #tpu.memory_space<vmem>>, vector<32x32xf32>
    %cst_19 = arith.constant dense<0.000000e+00> : vector<8x32xf32>
    %17 = tpu.matmul %5, %16, %cst_19 {dimension_numbers = #tpu.dot_dimension_numbers<[1], [0], [0], [1], [0, 0, 1, 1], [], []>} : vector<8x32xf32>, vector<32x32xf32>, vector<8x32xf32> -> vector<8x32xf32>
    %c0_20 = arith.constant 0 : index
    %c0_21 = arith.constant 0 : index
    %18 = vector.load %arg9[%c0_20, %c0_21] : memref<1x32xf32, #tpu.memory_space<vmem>>, vector<1x32xf32>
    %19 = vector.broadcast %18 : vector<1x32xf32> to vector<8x32xf32>
    %20 = arith.addf %17, %19 : vector<8x32xf32>
    %21 = vector.extract_strided_slice %10 {offsets = [0, 0], sizes = [8, 8], strides = [1, 1]} : vector<8x32xf32> to vector<8x8xf32>
    %22 = vector.extract_strided_slice %15 {offsets = [0, 0], sizes = [8, 8], strides = [1, 1]} : vector<8x32xf32> to vector<8x8xf32>
    %23 = vector.extract_strided_slice %20 {offsets = [0, 0], sizes = [8, 8], strides = [1, 1]} : vector<8x32xf32> to vector<8x8xf32>
    %cst_22 = arith.constant dense<0.000000e+00> : vector<8x8xf32>
    %24 = tpu.matmul %21, %22, %cst_22 {dimension_numbers = #tpu.dot_dimension_numbers<[1], [1], [0], [0], [0, 0, 1, 0], [], []>} : vector<8x8xf32>, vector<8x8xf32>, vector<8x8xf32> -> vector<8x8xf32>
    %cst_23 = arith.constant 0.353553385 : f32
    %25 = vector.broadcast %cst_23 : f32 to vector<8x8xf32>
    %26 = arith.mulf %24, %25 : vector<8x8xf32>
    %cst_24 = arith.constant dense<0xFF800000> : vector<8xf32>
    %27 = vector.multi_reduction <maximumf>, %26, %cst_24 [1] : vector<8x8xf32> to vector<8xf32>
    %28 = vector.shape_cast %27 : vector<8xf32> to vector<8x1xf32>
    %29 = vector.broadcast %28 : vector<8x1xf32> to vector<8x8xf32>
    %30 = arith.subf %26, %29 : vector<8x8xf32>
    %31 = math.exp %30 : vector<8x8xf32>
    %cst_25 = arith.constant dense<0.000000e+00> : vector<8xf32>
    %32 = vector.multi_reduction <add>, %31, %cst_25 [1] : vector<8x8xf32> to vector<8xf32>
    %33 = vector.shape_cast %32 : vector<8xf32> to vector<8x1xf32>
    %34 = vector.broadcast %33 : vector<8x1xf32> to vector<8x8xf32>
    %35 = arith.divf %31, %34 : vector<8x8xf32>
    %cst_26 = arith.constant dense<0.000000e+00> : vector<8x8xf32>
    %36 = tpu.matmul %35, %23, %cst_26 {dimension_numbers = #tpu.dot_dimension_numbers<[1], [0], [0], [1], [0, 0, 1, 1], [], []>} : vector<8x8xf32>, vector<8x8xf32>, vector<8x8xf32> -> vector<8x8xf32>
    %c0_27 = arith.constant 0 : index
    %c0_28 = arith.constant 0 : index
    %c0_29 = arith.constant 0 : index
    %c0_30 = arith.constant 0 : index
    %37 = vector.load %arg11[%c0_27, %c0_28, %c0_29, %c0_30] : memref<1x4x8x8xf32, #tpu.memory_space<vmem>>, vector<1x1x8x8xf32>
    %38 = vector.shape_cast %37 : vector<1x1x8x8xf32> to vector<8x8xf32>
    %39 = vector.shape_cast %35 : vector<8x8xf32> to vector<1x1x8x8xf32>
    tpu.vector_store %arg11[%c0_27, %c0_28, %c0_29, %c0_30], %39 {strides = array<i32>} : memref<1x4x8x8xf32, #tpu.memory_space<vmem>>, vector<1x1x8x8xf32>,
    %40 = vector.extract_strided_slice %10 {offsets = [0, 8], sizes = [8, 8], strides = [1, 1]} : vector<8x32xf32> to vector<8x8xf32>
    %41 = vector.extract_strided_slice %15 {offsets = [0, 8], sizes = [8, 8], strides = [1, 1]} : vector<8x32xf32> to vector<8x8xf32>
    %42 = vector.extract_strided_slice %20 {offsets = [0, 8], sizes = [8, 8], strides = [1, 1]} : vector<8x32xf32> to vector<8x8xf32>
    %cst_31 = arith.constant dense<0.000000e+00> : vector<8x8xf32>
    %43 = tpu.matmul %40, %41, %cst_31 {dimension_numbers = #tpu.dot_dimension_numbers<[1], [1], [0], [0], [0, 0, 1, 0], [], []>} : vector<8x8xf32>, vector<8x8xf32>, vector<8x8xf32> -> vector<8x8xf32>
    %cst_32 = arith.constant 0.353553385 : f32
    %44 = vector.broadcast %cst_32 : f32 to vector<8x8xf32>
    %45 = arith.mulf %43, %44 : vector<8x8xf32>
    %cst_33 = arith.constant dense<0xFF800000> : vector<8xf32>
    %46 = vector.multi_reduction <maximumf>, %45, %cst_33 [1] : vector<8x8xf32> to vector<8xf32>
    %47 = vector.shape_cast %46 : vector<8xf32> to vector<8x1xf32>
    %48 = vector.broadcast %47 : vector<8x1xf32> to vector<8x8xf32>
    %49 = arith.subf %45, %48 : vector<8x8xf32>
    %50 = math.exp %49 : vector<8x8xf32>
    %cst_34 = arith.constant dense<0.000000e+00> : vector<8xf32>
    %51 = vector.multi_reduction <add>, %50, %cst_34 [1] : vector<8x8xf32> to vector<8xf32>
    %52 = vector.shape_cast %51 : vector<8xf32> to vector<8x1xf32>
    %53 = vector.broadcast %52 : vector<8x1xf32> to vector<8x8xf32>
    %54 = arith.divf %50, %53 : vector<8x8xf32>
    %cst_35 = arith.constant dense<0.000000e+00> : vector<8x8xf32>
    %55 = tpu.matmul %54, %42, %cst_35 {dimension_numbers = #tpu.dot_dimension_numbers<[1], [0], [0], [1], [0, 0, 1, 1], [], []>} : vector<8x8xf32>, vector<8x8xf32>, vector<8x8xf32> -> vector<8x8xf32>
    %c0_36 = arith.constant 0 : index
    %c1 = arith.constant 1 : index
    %c0_37 = arith.constant 0 : index
    %c0_38 = arith.constant 0 : index
    %56 = vector.load %arg11[%c0_36, %c1, %c0_37, %c0_38] : memref<1x4x8x8xf32, #tpu.memory_space<vmem>>, vector<1x1x8x8xf32>
    %57 = vector.shape_cast %56 : vector<1x1x8x8xf32> to vector<8x8xf32>
    %58 = vector.shape_cast %54 : vector<8x8xf32> to vector<1x1x8x8xf32>
    tpu.vector_store %arg11[%c0_36, %c1, %c0_37, %c0_38], %58 {strides = array<i32>} : memref<1x4x8x8xf32, #tpu.memory_space<vmem>>, vector<1x1x8x8xf32>,
    %59 = vector.extract_strided_slice %10 {offsets = [0, 16], sizes = [8, 8], strides = [1, 1]} : vector<8x32xf32> to vector<8x8xf32>
    %60 = vector.extract_strided_slice %15 {offsets = [0, 16], sizes = [8, 8], strides = [1, 1]} : vector<8x32xf32> to vector<8x8xf32>
    %61 = vector.extract_strided_slice %20 {offsets = [0, 16], sizes = [8, 8], strides = [1, 1]} : vector<8x32xf32> to vector<8x8xf32>
    %cst_39 = arith.constant dense<0.000000e+00> : vector<8x8xf32>
    %62 = tpu.matmul %59, %60, %cst_39 {dimension_numbers = #tpu.dot_dimension_numbers<[1], [1], [0], [0], [0, 0, 1, 0], [], []>} : vector<8x8xf32>, vector<8x8xf32>, vector<8x8xf32> -> vector<8x8xf32>
    %cst_40 = arith.constant 0.353553385 : f32
    %63 = vector.broadcast %cst_40 : f32 to vector<8x8xf32>
    %64 = arith.mulf %62, %63 : vector<8x8xf32>
    %cst_41 = arith.constant dense<0xFF800000> : vector<8xf32>
    %65 = vector.multi_reduction <maximumf>, %64, %cst_41 [1] : vector<8x8xf32> to vector<8xf32>
    %66 = vector.shape_cast %65 : vector<8xf32> to vector<8x1xf32>
    %67 = vector.broadcast %66 : vector<8x1xf32> to vector<8x8xf32>
    %68 = arith.subf %64, %67 : vector<8x8xf32>
    %69 = math.exp %68 : vector<8x8xf32>
    %cst_42 = arith.constant dense<0.000000e+00> : vector<8xf32>
    %70 = vector.multi_reduction <add>, %69, %cst_42 [1] : vector<8x8xf32> to vector<8xf32>
    %71 = vector.shape_cast %70 : vector<8xf32> to vector<8x1xf32>
    %72 = vector.broadcast %71 : vector<8x1xf32> to vector<8x8xf32>
    %73 = arith.divf %69, %72 : vector<8x8xf32>
    %cst_43 = arith.constant dense<0.000000e+00> : vector<8x8xf32>
    %74 = tpu.matmul %73, %61, %cst_43 {dimension_numbers = #tpu.dot_dimension_numbers<[1], [0], [0], [1], [0, 0, 1, 1], [], []>} : vector<8x8xf32>, vector<8x8xf32>, vector<8x8xf32> -> vector<8x8xf32>
    %c0_44 = arith.constant 0 : index
    %c2 = arith.constant 2 : index
    %c0_45 = arith.constant 0 : index
    %c0_46 = arith.constant 0 : index
    %75 = vector.load %arg11[%c0_44, %c2, %c0_45, %c0_46] : memref<1x4x8x8xf32, #tpu.memory_space<vmem>>, vector<1x1x8x8xf32>
    %76 = vector.shape_cast %75 : vector<1x1x8x8xf32> to vector<8x8xf32>
    %77 = vector.shape_cast %73 : vector<8x8xf32> to vector<1x1x8x8xf32>
    tpu.vector_store %arg11[%c0_44, %c2, %c0_45, %c0_46], %77 {strides = array<i32>} : memref<1x4x8x8xf32, #tpu.memory_space<vmem>>, vector<1x1x8x8xf32>,
    %78 = vector.extract_strided_slice %10 {offsets = [0, 24], sizes = [8, 8], strides = [1, 1]} : vector<8x32xf32> to vector<8x8xf32>
    %79 = vector.extract_strided_slice %15 {offsets = [0, 24], sizes = [8, 8], strides = [1, 1]} : vector<8x32xf32> to vector<8x8xf32>
    %80 = vector.extract_strided_slice %20 {offsets = [0, 24], sizes = [8, 8], strides = [1, 1]} : vector<8x32xf32> to vector<8x8xf32>
    %cst_47 = arith.constant dense<0.000000e+00> : vector<8x8xf32>
    %81 = tpu.matmul %78, %79, %cst_47 {dimension_numbers = #tpu.dot_dimension_numbers<[1], [1], [0], [0], [0, 0, 1, 0], [], []>} : vector<8x8xf32>, vector<8x8xf32>, vector<8x8xf32> -> vector<8x8xf32>
    %cst_48 = arith.constant 0.353553385 : f32
    %82 = vector.broadcast %cst_48 : f32 to vector<8x8xf32>
    %83 = arith.mulf %81, %82 : vector<8x8xf32>
    %cst_49 = arith.constant dense<0xFF800000> : vector<8xf32>
    %84 = vector.multi_reduction <maximumf>, %83, %cst_49 [1] : vector<8x8xf32> to vector<8xf32>
    %85 = vector.shape_cast %84 : vector<8xf32> to vector<8x1xf32>
    %86 = vector.broadcast %85 : vector<8x1xf32> to vector<8x8xf32>
    %87 = arith.subf %83, %86 : vector<8x8xf32>
    %88 = math.exp %87 : vector<8x8xf32>
    %cst_50 = arith.constant dense<0.000000e+00> : vector<8xf32>
    %89 = vector.multi_reduction <add>, %88, %cst_50 [1] : vector<8x8xf32> to vector<8xf32>
    %90 = vector.shape_cast %89 : vector<8xf32> to vector<8x1xf32>
    %91 = vector.broadcast %90 : vector<8x1xf32> to vector<8x8xf32>
    %92 = arith.divf %88, %91 : vector<8x8xf32>
    %cst_51 = arith.constant dense<0.000000e+00> : vector<8x8xf32>
    %93 = tpu.matmul %92, %80, %cst_51 {dimension_numbers = #tpu.dot_dimension_numbers<[1], [0], [0], [1], [0, 0, 1, 1], [], []>} : vector<8x8xf32>, vector<8x8xf32>, vector<8x8xf32> -> vector<8x8xf32>
    %c0_52 = arith.constant 0 : index
    %c3 = arith.constant 3 : index
    %c0_53 = arith.constant 0 : index
    %c0_54 = arith.constant 0 : index
    %94 = vector.load %arg11[%c0_52, %c3, %c0_53, %c0_54] : memref<1x4x8x8xf32, #tpu.memory_space<vmem>>, vector<1x1x8x8xf32>
    %95 = vector.shape_cast %94 : vector<1x1x8x8xf32> to vector<8x8xf32>
    %96 = vector.shape_cast %92 : vector<8x8xf32> to vector<1x1x8x8xf32>
    tpu.vector_store %arg11[%c0_52, %c3, %c0_53, %c0_54], %96 {strides = array<i32>} : memref<1x4x8x8xf32, #tpu.memory_space<vmem>>, vector<1x1x8x8xf32>,
    %97 = tpu.concatenate %36, %55, %74, %93 in 1 : vector<8x8xf32>, vector<8x8xf32>, vector<8x8xf32>, vector<8x8xf32> -> vector<8x32xf32>
    %c0_55 = arith.constant 0 : index
    %c0_56 = arith.constant 0 : index
    %c0_57 = arith.constant 0 : index
    %98 = vector.load %arg10[%c0_55, %c0_56, %c0_57] : memref<1x8x32xf32, #tpu.memory_space<vmem>>, vector<1x8x32xf32>
    %99 = vector.shape_cast %98 : vector<1x8x32xf32> to vector<8x32xf32>
    %100 = vector.shape_cast %97 : vector<8x32xf32> to vector<1x8x32xf32>
    tpu.vector_store %arg10[%c0_55, %c0_56, %c0_57], %100 {strides = array<i32>} : memref<1x8x32xf32, #tpu.memory_space<vmem>>, vector<1x8x32xf32>,
    return
  }
  func.func @transform_0(%arg0: i32) -> (i32, i32, i32) {
    %c0_i32 = arith.constant 0 : i32
    %c0_i32_0 = arith.constant 0 : i32
    %c0_i32_1 = arith.constant 0 : i32
    return %arg0, %c0_i32, %c0_i32_0 : i32, i32, i32
  }
  func.func @transform_1(%arg0: i32) -> (i32, i32, i32) {
    %c0_i32 = arith.constant 0 : i32
    %c0_i32_0 = arith.constant 0 : i32
    %c0_i32_1 = arith.constant 0 : i32
    return %arg0, %c0_i32, %c0_i32_0 : i32, i32, i32
  }
  func.func @transform_2(%arg0: i32) -> (i32, i32, i32) {
    %c0_i32 = arith.constant 0 : i32
    %c0_i32_0 = arith.constant 0 : i32
    %c0_i32_1 = arith.constant 0 : i32
    return %arg0, %c0_i32, %c0_i32_0 : i32, i32, i32
  }
  func.func @transform_3(%arg0: i32) -> (i32, i32) {
    %c0_i32 = arith.constant 0 : i32
    %c0_i32_0 = arith.constant 0 : i32
    %c0_i32_1 = arith.constant 0 : i32
    return %c0_i32, %c0_i32_0 : i32, i32
  }
  func.func @transform_4(%arg0: i32) -> (i32, i32) {
    %c0_i32 = arith.constant 0 : i32
    %c0_i32_0 = arith.constant 0 : i32
    %c0_i32_1 = arith.constant 0 : i32
    return %c0_i32, %c0_i32_0 : i32, i32
  }
  func.func @transform_5(%arg0: i32) -> (i32, i32) {
    %c0_i32 = arith.constant 0 : i32
    %c0_i32_0 = arith.constant 0 : i32
    %c0_i32_1 = arith.constant 0 : i32
    return %c0_i32, %c0_i32_0 : i32, i32
  }
  func.func @transform_6(%arg0: i32) -> (i32, i32) {
    %c0_i32 = arith.constant 0 : i32
    %c0_i32_0 = arith.constant 0 : i32
    %c0_i32_1 = arith.constant 0 : i32
    return %c0_i32, %c0_i32_0 : i32, i32
  }
  func.func @transform_7(%arg0: i32) -> (i32, i32) {
    %c0_i32 = arith.constant 0 : i32
    %c0_i32_0 = arith.constant 0 : i32
    %c0_i32_1 = arith.constant 0 : i32
    return %c0_i32, %c0_i32_0 : i32, i32
  }
  func.func @transform_8(%arg0: i32) -> (i32, i32) {
    %c0_i32 = arith.constant 0 : i32
    %c0_i32_0 = arith.constant 0 : i32
    %c0_i32_1 = arith.constant 0 : i32
    return %c0_i32, %c0_i32_0 : i32, i32
  }
  func.func @transform_9(%arg0: i32) -> (i32, i32, i32) {
    %c0_i32 = arith.constant 0 : i32
    %c0_i32_0 = arith.constant 0 : i32
    %c0_i32_1 = arith.constant 0 : i32
    return %arg0, %c0_i32, %c0_i32_0 : i32, i32, i32
  }
  func.func @transform_10(%arg0: i32) -> (i32, i32, i32, i32) {
    %c0_i32 = arith.constant 0 : i32
    %c0_i32_0 = arith.constant 0 : i32
    %c0_i32_1 = arith.constant 0 : i32
    %c0_i32_2 = arith.constant 0 : i32
    return %arg0, %c0_i32, %c0_i32_0, %c0_i32_1 : i32, i32, i32, i32
  }
}

</mosaic_0001>

<bundles_post_ra>
// kernel: tpu_custom_call.1
= control target key start
LH: loop header
LB: loop body
LE: loop exit
PB: predicated region body
PF: predicated region fallthrough
CT: control target
= control target key end

     0   :  { %s2765_s0 = inlined_call_operand.hbm [shape: f32[2,8,32], index: 0, kind: input, shape index: {}]   ;;  %s2766_s1 = inlined_call_operand.hbm [shape: f32[2,8,32], index: 1, kind: input, shape index: {}]   ;;  %s2767_s2 = inlined_call_operand.hbm [shape: f32[2,8,32], index: 2, kind: input, shape index: {}]   ;;  %s2768_s3 = inlined_call_operand.hbm [shape: f32[32,32], index: 3, kind: input, shape index: {}]   ;;  %s2769_s4 = inlined_call_operand.vmem [shape: f32[1,32], index: 4, kind: input, shape index: {}]   ;;  %s2770_s5 = inlined_call_operand.hbm [shape: f32[32,32], index: 5, kind: input, shape index: {}]   ;;  %s2771_s6 = inlined_call_operand.vmem [shape: f32[1,32], index: 6, kind: input, shape index: {}]   ;;  %s2772_s7 = inlined_call_operand.hbm [shape: f32[32,32], index: 7, kind: input, shape index: {}]   ;;  %s2773_s8 = inlined_call_operand.vmem [shape: f32[1,32], index: 8, kind: input, shape index: {}]   ;;  %s2774_s9 = inlined_call_operand.hbm [shape: f32[2,8,32], index: 9, kind: output, shape index: {0}]   ;;  %s2775_s10 = inlined_call_operand.hbm [shape: f32[2,4,8,8], index: 10, kind: output, shape index: {1}]  }
   0x1   :  { %2802 = sst [smem:[#allocation28_spill]] %s2766_s1 }
   0x2   :  { %2803 = sst [smem:[#allocation29_spill]] %s2768_s3 }
   0x3   :  { %2804 = sst [smem:[#allocation30_spill]] %s2773_s8 }
   0x4   :  { %2805 = sst [smem:[#allocation31_spill]] %s2774_s9 }
   0x5   :  { %2806 = sst [smem:[#allocation32_spill]] %s2775_s10 }
   0x6   :  { %16 = vsyncpa [#allocation3], 0 }
   0x7   :  { %18 = vsyncpa [#allocation3 + $0x1], 0 }
   0x8   :  { %19 = vsyncpa [#allocation6], 0 }
   0x9   :  { %21 = vsyncpa [#allocation6 + $0x1], 0 }
   0xa   :  { %22 = vsyncpa [#allocation9], 0 }
   0xb   :  { %23 = vsyncpa [#allocation12], 0 }
   0xc   :  { %24 = vsyncpa [#allocation4], 0 }
   0xd   :  { %26 = vsyncpa [#allocation4 + $0x1], 0 }
   0xe   :  { %27 = vsyncpa [#allocation15], 0 }
   0xf   :  { %29 = vsyncpa [#allocation15 + $0x1], 0  ;;  %s2305_s13 = smov 0   ;;  %s2307_s14 = smov 0  }
  0x10   :  { %s2309_s15 = smov 0   ;;  %s2311_s16 = smov 0  }
  0x11 LB: > { %2807 = sst [smem:[#allocation22_spill]] %s2216_s13  ;;  %s2326_s17 = sadd.s32 4294967295, %s2228_s16   ;;  %s2228_s16 = sphi %s2311_s16, %s2848_s16   ;;  %s2224_s15 = sphi %s2309_s15, %s2852_s15   ;;  %s2220_s14 = sphi %s2307_s14, %s2851_s14   ;;  %s2216_s13 = sphi %s2305_s13, %s2850_s13  }
  0x12   : > { %2808 = sst [smem:[#allocation23_spill]] %s2228_s16  ;;  %s1652_s18 = sadd.s32 4294967294, %s2228_s16  }
  0x13   : > { %p55_p0 = scmp.ne.s32.totalorder %s2220_s14, %s2216_s13  ;;  %p2777_p1 = scmp.eq.s32.totalorder %s2326_s17, 0 }
  0x14   : > { %p263_p3 = scmp.eq.s32.totalorder %s1652_s18, 1  ;;  %p1653_p5 = scmp.ge.s32.totalorder %s2228_s16, 1 }
  0x15   : > { %p2335_p4 = por %p2777_p1, %p55_p0  ;;  %p296_p7 = scmp.lt.s32.totalorder %s2228_s16, 3 }
  0x16   : > { %p2340_p6 = por %p263_p3, %p55_p0  ;;  %s2230_s22 = smov [#allocation8]  }
  0x17   : > { %s2809_s19 = scalar_select %p2335_p4, 1, 0 }
  0x18   : > { %s2810_s20 = scalar_select %p2340_p6, 1, 0 }
  0x19   : > { %p2345_p8 = pnand %p1653_p5, %p296_p7  ;;  %s308_s23 = sshll.u32 %s2230_s22, 4  ;;  %s2349_s23 = int_to_ptr.vmem [resolvable:$true] %s308_s23 }
  0x1a   : > { %2811 = sst [smem:[#allocation24_spill]] %s2810_s20  ;;  %s2361_s25 = sadd.s32 1, %s2228_s16  }
  0x1b   : > { %s2812_s21 = scalar_select %p2345_p8, 1, 0 }
  0x1c   : > { %p1846_p9 = pneg %p2345_p8  ;;  %2814 = sst [smem:[#allocation25_spill]] %s2361_s25 }
  0x1d   : > { %s42_s26 = sadd.s32 1, %s2224_s15  ;;  %s39_s27 = ssub.s32 %s2228_s16, %s2361_s25 }
  0x1e   : > { %p2356_p11 = pnand %p1846_p9, %p2777_p1  ;;  %s2815_s3 = sld [smem:[#allocation29_spill]] }
  0x20   : > { %s2813_s24 = scalar_select %p2356_p11, 1, 0 }
  0x21   : > { %p2374_p13 = pneg %p2356_p11 }
  0x23   : > { %s2816_s18 = scalar_select %p2374_p13, 1, 0 }
  0x24   : > { %s1944_s30 = scalar_lea.hbm %s2815_s3, 512 }
  0x25   : > { %p1945_p12 = scmp.ne.s32.totalorder %s2815_s3, %s1944_s30  ;;  %p1951_p5 = scmp.lt.u32.totalorder %s1944_s30, %s2815_s3 }
  0x27   : > { %p1947_p0 = pnand %p2374_p13, %p1945_p12 }
  0x29   : > { %p1948_p3 = pneg %p1947_p0 }
  0x2b   : > { %p1953_p7 = pnand %p1951_p5, %p1948_p3 }
  0x2d   : > { %1956 = shalt.err (!%p1953_p7)
}
  0x2e   : > { %s1957_s28 = scalar_lea.vmem %s2349_s23, 512  ;;  %p1965_p2 = scmp.lt.s32.totalorder %s2349_s23, %s2349_s23 }
  0x2f   : > { %p1958_p9 = scmp.ne.s32.totalorder %s2349_s23, %s1957_s28  ;;  %p1966_p6 = scmp.lt.s32.totalorder %s1957_s28, %s1957_s28 }
  0x31   : > { %p1960_p10 = pnand %p1958_p9, %p2374_p13  ;;  %p1967_p12 = por %p1966_p6, %p1965_p2 }
  0x33   : > { %p1961_p1 = pneg %p1960_p10 }
  0x35   : > { %p1968_p0 = pnand %p1967_p12, %p1961_p1 }
  0x37   : > { %1971 = shalt.err (!%p1968_p0)
}
  0x38   : > { %s2781_s29 = smov 128   ;;  %s2783_s20 = smov 8  }
  0x39   : > { %1849 = dma.hbm_to_vmem [thread:$0]  (!%p2356_p11), %s2815_s3, 512, %s2349_s23, [#allocation9], %s2781_s29, %s2781_s29, %s2783_s20  }
  0x3a   : > { %p40_p1 = scmp.eq.s32.totalorder %s39_s27, 0  ;;  %p49_p2 = scmp.ne.s32.totalorder %s2224_s15, %s2220_s14 }
  0x3b   : > { %p50_p6 = scmp.eq.s32.totalorder %s2228_s16, 0  ;;  %p1876_p10 = scmp.lt.s32.totalorder %s2228_s16, 2 }
  0x3c   : > { %s2403_s12 = scalar_select %p40_p1, %s2224_s15, %s42_s26  }
  0x3d   : > { %p51_p3 = por %p50_p6, %p49_p2  ;;  %p2818_p5 = scmp.eq.s32.totalorder %s2326_s17, 1 }
  0x3e   : > { %2817 = sst [smem:[#allocation26_spill]] %s2403_s12  ;;  %s2785_s28 = sand.u32 1, %s2224_s15  }
  0x3f   : > { %p2407_p7 = por %p2818_p5, %p49_p2  ;;  %s2413_s25 = sshll.u32 %s2228_s16, 7 }
  0x40   : > { %s2417_s13 = sshll.u32 %s2785_s28, 3  ;;  %p2419_p9 = pnand %p1876_p10, %p51_p3 }
  0x41   : > { %s2819_s22 = scalar_select %p2407_p7, 1, 0 }
  0x42   : > { %s2821_s23 = scalar_select %p2419_p9, 1, 0 }
  0x43   : > { %2820 = sst [smem:[#allocation27_spill]] %s2819_s22  ;;  %s375_s26 = sand.u32 1, %s2228_s16  }
  0x44   : > { %s2822_s1 = sld [smem:[#allocation28_spill]]  ;;  %s379_s29 = scalar_lea.vmem [#allocation5], %s2417_s13 }
  0x45   : > { %s386_s20 = sshll.u32 %s379_s29, 4  ;;  %s2433_s28 = scalar_lea.sflag [#allocation6], %s375_s26  ;;  %s2431_s20 = int_to_ptr.vmem [resolvable:$true] %s386_s20 }
  0x46   : > { %p2439_p0 = pneg %p2419_p9 }
  0x48   : > { %s2823_s12 = scalar_select %p2439_p0, 1, 0 }
  0x4a   : > { %s2428_s11 = scalar_lea.hbm %s2822_s1, %s2413_s25  ;;  %s1977_s16 = scalar_lea.hbm %s2822_s1, 256 }
  0x4b   : > { %s1972_s3 = scalar_lea.hbm %s2428_s11, 128  ;;  %p1978_p6 = scmp.lt.u32.totalorder %s2428_s11, %s2822_s1 }
  0x4c   : > { %p1973_p12 = scmp.ne.s32.totalorder %s2428_s11, %s1972_s3  ;;  %p1979_p10 = scmp.lt.u32.totalorder %s1977_s16, %s1972_s3 }
  0x4d   : > { %p1981_p5 = scmp.lt.u32.totalorder %s1972_s3, %s2428_s11 }
  0x4e   : > { %p1975_p1 = pnand %p2439_p0, %p1973_p12  ;;  %p1980_p3 = por %p1979_p10, %p1978_p6 }
  0x50   : > { %p1976_p2 = pneg %p1975_p1  ;;  %p1982_p7 = por %p1981_p5, %p1980_p3 }
  0x52   : > { %p1983_p4 = pnand %p1982_p7, %p1976_p2 }
  0x54   : > { %1986 = shalt.err (!%p1983_p4)
}
  0x55   : > { %s1987_s26 = scalar_lea.vmem %s2431_s20, 128  ;;  %s2233_s27 = smov [#allocation5]  }
  0x56   : > { %p1988_p12 = scmp.ne.s32.totalorder %s2431_s20, %s1987_s26  ;;  %s1992_s30 = sshll.u32 %s2233_s27, 4  ;;  %s1993_s30 = int_to_ptr.vmem [resolvable:$false] %s1992_s30 }
  0x57   : > { %s1994_s9 = scalar_lea.vmem %s1993_s30, 256  ;;  %p1995_p11 = scmp.lt.s32.totalorder %s2431_s20, %s1993_s30 }
  0x58   : > { %p1990_p1 = pnand %p1988_p12, %p2439_p0  ;;  %p1996_p13 = scmp.lt.s32.totalorder %s1994_s9, %s1987_s26 }
  0x5a   : > { %p1991_p8 = pneg %p1990_p1  ;;  %p1997_p6 = por %p1996_p13, %p1995_p11 }
  0x5c   : > { %p1998_p10 = pnand %p1997_p6, %p1991_p8 }
  0x5e   : > { %2001 = shalt.err (!%p1998_p10)
}
  0x5f   : > { %1862 = dma.hbm_to_vmem [thread:$0]  (!%p2419_p9), %s2428_s11, 128, %s2431_s20, %s2433_s28  }
  0x60   : > { %s2234_s3 = smov [#allocation10]   ;;  %s2235_s29 = smov [#allocation11]  }
  0x61   : > { %s324_s16 = sshll.u32 %s2234_s3, 4  ;;  %s340_s1 = sshll.u32 %s2235_s29, 4  ;;  %s325_s16 = int_to_ptr.vmem [resolvable:$true] %s324_s16  ;;  %s341_s1 = int_to_ptr.vmem [resolvable:$true] %s340_s1 }
  0x62   : > { %s2002_s30 = scalar_lea.hbm %s2770_s5, 512  ;;  %p2824_p8 = scmp.ne.s32.totalorder %s2816_s18, 0 }
  0x63   : > { %p2003_p4 = scmp.ne.s32.totalorder %s2770_s5, %s2002_s30  ;;  %p2009_p7 = scmp.lt.u32.totalorder %s2002_s30, %s2770_s5 }
  0x65   : > { %p2005_p11 = pnand %p2003_p4, %p2824_p8 }
  0x67   : > { %p2006_p13 = pneg %p2005_p11 }
  0x69   : > { %p2011_p2 = pnand %p2009_p7, %p2006_p13 }
  0x6b   : > { %2014 = shalt.err (!%p2011_p2)
}
  0x6c   : > { %s2015_s20 = scalar_lea.vmem %s325_s16, 512  ;;  %p2023_p1 = scmp.lt.s32.totalorder %s325_s16, %s325_s16 }
  0x6d   : > { %p2016_p3 = scmp.ne.s32.totalorder %s325_s16, %s2015_s20  ;;  %p2024_p6 = scmp.lt.s32.totalorder %s2015_s20, %s2015_s20 }
  0x6f   : > { %p2018_p5 = pnand %p2016_p3, %p2824_p8  ;;  %p2025_p10 = por %p2024_p6, %p2023_p1 }
  0x71   : > { %p2019_p12 = pneg %p2018_p5 }
  0x73   : > { %p2026_p9 = pnand %p2025_p10, %p2019_p12 }
  0x75   : > { %2029 = shalt.err (!%p2026_p9)
}
  0x76   : > { %p2825_p4 = scmp.ne.s32.totalorder %s2813_s24, 0  ;;  %s2826_s10 = smov 8  }
  0x77   : > { %s2827_s11 = smov 128   ;;  %s2030_s27 = scalar_lea.hbm %s2772_s7, 512 }
  0x78   : > { %1852 = dma.hbm_to_vmem [thread:$0]  (!%p2825_p4), %s2770_s5, 512, %s325_s16, [#allocation9], %s2827_s11, %s2827_s11, %s2826_s10  }
  0x79   : > { %p2031_p11 = scmp.ne.s32.totalorder %s2772_s7, %s2030_s27  ;;  %p2037_p7 = scmp.lt.u32.totalorder %s2030_s27, %s2772_s7 }
  0x7b   : > { %p2033_p9 = pnand %p2031_p11, %p2824_p8 }
  0x7d   : > { %p2034_p13 = pneg %p2033_p9 }
  0x7f   : > { %p2039_p2 = pnand %p2037_p7, %p2034_p13 }
  0x81   : > { %2042 = shalt.err (!%p2039_p2)
}
  0x82   : > { %s2043_s8 = scalar_lea.vmem %s341_s1, 512  ;;  %p2051_p1 = scmp.lt.s32.totalorder %s341_s1, %s341_s1 }
  0x83   : > { %p2044_p3 = scmp.ne.s32.totalorder %s341_s1, %s2043_s8  ;;  %p2052_p6 = scmp.lt.s32.totalorder %s2043_s8, %s2043_s8 }
  0x85   : > { %p2046_p5 = pnand %p2044_p3, %p2824_p8  ;;  %p2053_p10 = por %p2052_p6, %p2051_p1 }
  0x87   : > { %p2047_p12 = pneg %p2046_p5 }
  0x89   : > { %p2054_p0 = pnand %p2053_p10, %p2047_p12 }
  0x8b   : > { %2057 = shalt.err (!%p2054_p0)
}
  0x8c   : > { %1855 = dma.hbm_to_vmem [thread:$0]  (!%p2825_p4), %s2772_s7, 512, %s341_s1, [#allocation12], %s2827_s11, %s2827_s11, %s2826_s10  }
  0x8d   : > { %s2509_s29 = scalar_lea.hbm %s2765_s0, %s2413_s25  ;;  %s361_s24 = scalar_lea.vmem [#allocation2], %s2417_s13 }
  0x8e   : > { %s368_s27 = sshll.u32 %s361_s24, 4  ;;  %s2518_s9 = scalar_lea.hbm %s2767_s2, %s2413_s25  ;;  %s2512_s27 = int_to_ptr.vmem [resolvable:$true] %s368_s27 }
  0x8f   : > { %s2828_s20 = sand.u32 1, %s2224_s15   ;;  %s2058_s10 = scalar_lea.hbm %s2509_s29, 128 }
  0x90   : > { %s358_s1 = scalar_lea.sflag [#allocation3], %s2828_s20  ;;  %p2059_p0 = scmp.ne.s32.totalorder %s2509_s29, %s2058_s10 }
  0x91   : > { %p2829_p8 = scmp.ne.s32.totalorder %s2823_s12, 0  ;;  %s2063_s16 = scalar_lea.hbm %s2765_s0, 256 }
  0x92   : > { %p2064_p9 = scmp.lt.u32.totalorder %s2509_s29, %s2765_s0  ;;  %p2065_p13 = scmp.lt.u32.totalorder %s2063_s16, %s2058_s10 }
  0x93   : > { %p2061_p4 = pnand %p2059_p0, %p2829_p8  ;;  %p2067_p2 = scmp.lt.u32.totalorder %s2058_s10, %s2509_s29 }
  0x94   : > { %p2066_p7 = por %p2065_p13, %p2064_p9 }
  0x95   : > { %p2062_p11 = pneg %p2061_p4 }
  0x96   : > { %p2068_p3 = por %p2067_p2, %p2066_p7 }
  0x98   : > { %p2069_p5 = pnand %p2068_p3, %p2062_p11 }
  0x9a   : > { %2072 = shalt.err (!%p2069_p5)
}
  0x9b   : > { %s2073_s25 = scalar_lea.vmem %s2512_s27, 128  ;;  %s2236_s3 = smov [#allocation2]  }
  0x9c   : > { %p2074_p12 = scmp.ne.s32.totalorder %s2512_s27, %s2073_s25  ;;  %s2078_s24 = sshll.u32 %s2236_s3, 4  ;;  %s2079_s24 = int_to_ptr.vmem [resolvable:$false] %s2078_s24 }
  0x9d   : > { %s2080_s30 = scalar_lea.vmem %s2079_s24, 256  ;;  %p2081_p10 = scmp.lt.s32.totalorder %s2512_s27, %s2079_s24 }
  0x9e   : > { %p2076_p1 = pnand %p2074_p12, %p2829_p8  ;;  %p2082_p0 = scmp.lt.s32.totalorder %s2080_s30, %s2073_s25 }
  0xa0   : > { %p2077_p6 = pneg %p2076_p1  ;;  %p2083_p4 = por %p2082_p0, %p2081_p10 }
  0xa2   : > { %p2084_p9 = pnand %p2083_p4, %p2077_p6 }
  0xa4   : > { %2087 = shalt.err (!%p2084_p9)
}
  0xa5   : > { %p2830_p11 = scmp.ne.s32.totalorder %s2821_s23, 0  ;;  %s397_s26 = scalar_lea.vmem [#allocation7], %s2417_s13 }
  0xa6   : > { %s404_s20 = sshll.u32 %s397_s26, 4  ;;  %s2088_s10 = scalar_lea.hbm %s2518_s9, 128  ;;  %s405_s20 = int_to_ptr.vmem [resolvable:$true] %s404_s20 }
  0xa7   : > { %1859 = dma.hbm_to_vmem [thread:$0]  (!%p2830_p11), %s2509_s29, 128, %s2512_s27, %s358_s1  }
  0xa8   : > { %p2089_p13 = scmp.ne.s32.totalorder %s2518_s9, %s2088_s10  ;;  %s2093_s16 = scalar_lea.hbm %s2767_s2, 256 }
  0xa9   : > { %p2094_p3 = scmp.lt.u32.totalorder %s2518_s9, %s2767_s2  ;;  %p2095_p5 = scmp.lt.u32.totalorder %s2093_s16, %s2088_s10 }
  0xaa   : > { %p2091_p7 = pnand %p2089_p13, %p2829_p8  ;;  %p2097_p1 = scmp.lt.u32.totalorder %s2088_s10, %s2518_s9 }
  0xab   : > { %p2096_p12 = por %p2095_p5, %p2094_p3 }
  0xac   : > { %p2092_p2 = pneg %p2091_p7 }
  0xad   : > { %p2098_p6 = por %p2097_p1, %p2096_p12 }
  0xaf   : > { %p2099_p10 = pnand %p2098_p6, %p2092_p2 }
  0xb1   : > { %2102 = shalt.err (!%p2099_p10)
}
  0xb2   : > { %s2103_s13 = scalar_lea.vmem %s405_s20, 128  ;;  %s2237_s29 = smov [#allocation7]  }
  0xb3   : > { %p2104_p0 = scmp.ne.s32.totalorder %s405_s20, %s2103_s13  ;;  %s2108_s27 = sshll.u32 %s2237_s29, 4  ;;  %s2109_s27 = int_to_ptr.vmem [resolvable:$false] %s2108_s27 }
  0xb4   : > { %s2110_s1 = scalar_lea.vmem %s2109_s27, 256  ;;  %p2111_p13 = scmp.lt.s32.totalorder %s405_s20, %s2109_s27 }
  0xb5   : > { %p2106_p4 = pnand %p2104_p0, %p2829_p8  ;;  %p2112_p7 = scmp.lt.s32.totalorder %s2110_s1, %s2103_s13 }
  0xb7   : > { %p2107_p9 = pneg %p2106_p4  ;;  %p2113_p11 = por %p2112_p7, %p2111_p13 }
  0xb9   : > { %p2114_p3 = pnand %p2113_p11, %p2107_p9 }
  0xbb   : > { %2117 = shalt.err (!%p2114_p3)
}
  0xbc   : > { %p2831_p5 = scmp.ne.s32.totalorder %s2821_s23, 0  ;;  %p2832_p2 = scmp.ne.s32.totalorder %s2812_s21, 0 }
  0xbd   : > { %s2565_s12 = sand.u32 (!%p2832_p2), 1, %s2220_s14   ;;  %p2833_p8 = scmp.ne.s32.totalorder (!%p2832_p2), %s2809_s19, 0 }
  0xbe   : > { %1865 = dma.hbm_to_vmem [thread:$0]  (!%p2831_p5), %s2518_s9, 128, %s405_s20, %s2433_s28  }
  0xbf   : > { %413 = sbr.rel (%p2832_p2) target bundleno = 1438 (0x59e), region = 56  ;;  %s2568_s25 = sshll.u32 (!%p2832_p2), %s2565_s12, 3 }
  0xc0   : > { %s416_s3 = scalar_lea.sflag (!%p2832_p2), [#allocation3], %s2565_s12  ;;  %s419_s24 = scalar_lea.vmem (!%p2832_p2), [#allocation2], %s2568_s25 }
  0xc6   : > { %2191 = dma.done.wait (%p2833_p8), %s416_s3, 128  }
  0xc7   : > { %2193 = vsyncadd (%p2833_p8), %s416_s3, 4294967168  ;;  %s424_s21 = sand.u32 1, %s2326_s17   ;;  %s428_s23 = scalar_lea.vmem [#allocation5], %s2568_s25 }
  0xc8   : > { %s425_s28 = scalar_lea.sflag [#allocation6], %s424_s21 }
  0xc9   : > { %2195 = dma.done.wait (%p2833_p8), %s425_s28, 256  }
  0xca   : > { %2197 = vsyncadd (%p2833_p8), %s425_s28, 4294967040  ;;  %s437_s9 = scalar_lea.vmem [#allocation7], %s2568_s25  ;;  %p2834_p11 = scmp.eq.s32.totalorder %s2326_s17, 0 }
  0xcc   : > { %2199 = dma.done.wait (%p2834_p11), [#allocation9], 1024   ;;  %p2835_p12 = pmov %p2834_p11 }
  0xcd   : > { %p2836_p1 = pmov %p2834_p11 }
  0xce   : > { %2201 = vsyncadd (%p2835_p12), [#allocation9], 4294966272 }
  0xcf   : > { %2203 = dma.done.wait (%p2836_p1), [#allocation12], 512   ;;  %p2837_p6 = pmov %p2836_p1 }
  0xd0   : > { %v2238_v0 = vmov 0.0|0.0   ;;  %vm2239_vm0 = vmmov 0   ;;  %v2240_v1 = vmov 0.0   ;;  %v589_v2 = vld [vmem:[#allocation10] sm:$0xff]  ;;  %v590_v3 = vld [vmem:[#allocation10 + $0x8] sm:$0xff]  ;;  %v591_v7 = vld [vmem:[#allocation10 + $0x10] sm:$0xff] }
  0xd1   : > { %2205 = vsyncadd (%p2837_p6), [#allocation12], 4294966784  ;;  %1812 = vmatprep.subr.bf16.mxu1 %v2238_v0  ;;  %1806 = vmatprep.subr.bf16.mxu0 %v2238_v0  ;;  %v504_v4 = vld [vmem:[#allocation8] sm:$0xff]  ;;  %v1813_v5 = vpack.c.bf16 %v590_v3, %v589_v2  ;;  %v505_v6 = vld [vmem:[#allocation8 + $0x8] sm:$0xff]  ;;  %vm515_vm1 = vcmask 261120   ;;  %vm757_vm2 = vcmask 64512  }
  0xd2   : > { %1752 = vmatprep.mubr.msk.f32.mxu1 %vm2239_vm0, %v2240_v1  ;;  %1741 = vmatprep.mubr.msk.f32.mxu0 %vm2239_vm0, %v2240_v1  ;;  %v592_v8 = vld [vmem:[#allocation10 + $0x18] sm:$0xff]  ;;  %v1807_v9 = vpack.c.bf16 %v505_v6, %v504_v4  ;;  %v506_v10 = vld [vmem:[#allocation8 + $0x10] sm:$0xff]  ;;  %v502_v14 = vld [vmem:[%s428_s23] sm:$0xff]  ;;  %s2241_s10 = smov 112   ;;  %s2242_s11 = smov 120  }
  0xd3   : > { %v507_v11 = vld [vmem:[#allocation8 + $0x18] sm:$0xff]  ;;  %1814 = vmatpush3.bf16.msra.mxu1 %v1813_v5  ;;  %v1816_v12 = vpack.c.bf16 %v592_v8, %v591_v7  ;;  %v673_v16 = vld [vmem:[#allocation11] sm:$0xff]  ;;  %v674_v17 = vld [vmem:[#allocation11 + $0x8] sm:$0xff]  ;;  %s2243_s8 = smov 104   ;;  %s2838_s18 = sld [smem:[#allocation30_spill]] }
  0xd4   : > { %1808 = vmatpush3.bf16.msra.mxu0 %v1807_v9  ;;  %1815 = vmatprep.subr.bf16.mxu1 %v2238_v0  ;;  %v1810_v13 = vpack.c.bf16 %v507_v11, %v506_v10  ;;  %v501_v15 = vld [vmem:[%s419_s24] sm:$0xff]  ;;  %v1819_v19 = vpack.c.bf16 %v674_v17, %v673_v16  ;;  %s1672_s13 = sshll.u32 %s2565_s12, 5  ;;  %s2839_s27 = sld [smem:[#allocation27_spill]] }
  0xd5   : > { %1809 = vmatprep.subr.bf16.mxu0 %v2238_v0  ;;  %v675_v18 = vld [vmem:[#allocation11 + $0x10] sm:$0xff]  ;;  %v676_v20 = vld [vmem:[#allocation11 + $0x18] sm:$0xff]  ;;  %s2657_s29 = scalar_lea.vmem [#allocation14], %s1672_s13  ;;  %s1701_s1 = sshll.u32 %s2326_s17, 9 }
  0xd6   : > { %v1822_v21 = vpack.c.bf16 %v676_v20, %v675_v18  ;;  %v503_v22 = vld [vmem:[%s437_s9] sm:$0xff]  ;;  %s1475_s3 = sshll.u32 %s2657_s29, 4  ;;  %s2244_s24 = smov 8   ;;  %s2687_s3 = int_to_ptr.vmem [resolvable:$true] %s1475_s3 }
  0xd7   : > { %1817 = vmatpush3.bf16.msra.mxu1 %v1816_v12  ;;  %v1675_v23 = vld [vmem:[%s2771_s6] ss:$0 sm:$0xff]  ;;  %s2840_s23 = sld [smem:[#allocation32_spill]]  ;;  %s1449_s19 = scalar_lea.sflag [#allocation15], %s2565_s12 }
  0xd8   : > { %1811 = vmatpush3.bf16.msra.mxu0 %v1810_v13  ;;  %1766 = vmatprep.subr.mxu1 %v2240_v1  ;;  %v1673_v25 = vld [vmem:[%s2769_s4] ss:$0 sm:$0xff]  ;;  %s2118_s30 = scalar_lea.vmem %s2687_s3, 512  ;;  %s2245_s26 = smov [#allocation14]  }
  0xd9   : > { %1818 = vmatprep.subr.bf16.mxu0 %v2238_v0  ;;  %v1677_v37 = vld [vmem:[%s2838_s18] ss:$0 sm:$0xff]  ;;  %p2119_p10 = scmp.ne.s32.totalorder %s2687_s3, %s2118_s30  ;;  %s2122_s20 = sshll.u32 %s2245_s26, 4  ;;  %s2123_s20 = int_to_ptr.vmem [resolvable:$false] %s2122_s20 }
  0xda   : > { %1753 = vmatmul.mubr.msk.f32.vlgmr.msra.gmra.mrb[0].mxu1 %vm515_vm1, %v502_v14  ;;  %p2841_p0 = scmp.ne.s32.totalorder %s2839_s27, 0  ;;  %p2125_p13 = scmp.lt.s32.totalorder %s2687_s3, %s2123_s20 }
  0xdb   : > { %1742 = vmatmul.mubr.msk.f32.vlgmr.msra.gmra.mrb[0].mxu0 %vm515_vm1, %v501_v15  ;;  %1768 = vmatprep.mubr.msk.f32.mxu1 %vm2239_vm0, %v2240_v1 }
  0xdc   : > { %1763 = vmatprep.mubr.msk.f32.mxu0 %vm2239_vm0, %v2240_v1  ;;  %1820 = vmatpush3.bf16.msra.mxu0 %v1819_v19  ;;  %p2120_p4 = pnand %p2119_p10, %p2841_p0 }
  0xdd   : > { %1821 = vmatprep.subr.bf16.mxu0 %v2238_v0  ;;  %s2685_s9 = scalar_lea.hbm %s2840_s23, %s1701_s1 }
  0xde   : > { %p2121_p9 = pneg %p2120_p4 }
  0xe0   : > { %1823 = vmatpush3.bf16.msra.mxu0 %v1822_v21 }
  0xe1   : > { %1776 = vmatprep.subr.mxu0 %v2240_v1 }
  0xe3   : > { %1764 = vmatmul.mubr.msk.f32.vlgmr.msra.gmra.mrb[2].mxu0 %vm515_vm1, %v503_v22 }
  0xe4   : > { %1778 = vmatprep.mubr.msk.f32.mxu0 %vm2239_vm0, %v2240_v1 }
 0x1ad   : > { %v669_v24 = vpop.f32.mrb[0].mxu1 }
 0x1ae   : > { %v670_v26 = vadd.f32 %v1675_v23, %v669_v24  ;;  %v1754_v27 = vpop.f32.mrb[1].mxu1  ;;  %v585_v28 = vpop.f32.mrb[0].mxu0 }
 0x1af   : > { %v1743_v29 = vpop.f32.mrb[1].mxu0  ;;  %v586_v30 = vadd.f32 %v1673_v25, %v585_v28 }
 0x1b0   : > { %1091 = vrot.lane.b32.xlu1 %v670_v26, %s2241_s10  ;;  %922 = vrot.lane.b32.xlu0 %v670_v26, %s2242_s11 }
 0x1b1   : > { %1767 = vmatpush3.xpose.msk.msra.mxu1 %vm757_vm2, %v670_v26 }
 0x1b2   : > { %1771 = vmatprep.subr.mxu1 %v2240_v1 }
 0x1b4   : > { %1769 = vmatmul.mubr.msk.f32.vlgmr.msra.gmra.mrb[2].mxu1 %vm757_vm2, %v586_v30  ;;  %1089 = vrot.lane.b32.xlu1 %v586_v30, %s2241_s10 }
 0x1b5   : > { %920 = vrot.lane.b32.xlu0 %v586_v30, %s2242_s11  ;;  %1773 = vmatprep.mubr.msk.f32.mxu1 %vm2239_vm0, %v2240_v1 }
 0x1b6   : > { %v753_v38 = vpop.f32.mrb[2].mxu0 }
 0x1b7   : > { %v754_v39 = vadd.f32 %v1677_v37, %v753_v38  ;;  %v1765_v40 = vpop.f32.mrb[3].mxu0 }
 0x1b8   : > { %1257 = vrot.lane.b32.xlu1 %v586_v30, %s2243_s8 }
 0x1b9   : > { %1259 = vrot.lane.b32.xlu0 %v670_v26, %s2243_s8  ;;  %1772 = vmatpush3.msra.mxu1 %v754_v39 }
 0x1ba   : > { %1781 = vmatprep.subr.mxu1 %v2240_v1 }
 0x222   : > { %v923_v31 = vpop.permute.xlu0 %922  ;;  %v1092_v32 = vpop.permute.xlu1 %1091 }
 0x223   : > { %1777 = vmatpush3.xpose.msk.msra.mxu0 %vm757_vm2, %v923_v31 }
 0x224   : > { %1786 = vmatprep.subr.mxu0 %v2240_v1 }
 0x226   : > { %v1090_v34 = vpop.permute.xlu1 %1089 }
 0x227   : > { %v921_v33 = vpop.permute.xlu0 %920 }
 0x228   : > { %1779 = vmatmul.mubr.msk.f32.vlgmr.msra.gmra.mrb[4].mxu0 %vm757_vm2, %v921_v33 }
 0x229   : > { %1787 = vmatpush3.xpose.msk.msra.mxu0 %vm757_vm2, %v1092_v32  ;;  %1788 = vmatprep.mubr.msk.f32.mxu0 %vm2239_vm0, %v2240_v1 }
 0x22a   : > { %1796 = vmatprep.subr.mxu0 %v2240_v1  ;;  %v1258_v36 = vpop.permute.xlu1 %1257 }
 0x22b   : > { %v1260_v35 = vpop.permute.xlu0 %1259 }
 0x22c   : > { %1789 = vmatmul.mubr.msk.f32.vlgmr.msra.gmra.mrb[6].mxu0 %vm757_vm2, %v1090_v34 }
 0x22d   : > { %1797 = vmatpush3.xpose.msk.msra.mxu0 %vm757_vm2, %v1260_v35  ;;  %1798 = vmatprep.mubr.msk.f32.mxu0 %vm2239_vm0, %v2240_v1 }
 0x230   : > { %1799 = vmatmul.mubr.msk.f32.vlgmr.msra.gmra.mrb[8].mxu0 %vm757_vm2, %v1258_v36 }
 0x287   : > { %v830_v41 = vpop.f32.mrb[2].mxu1 }
 0x288   : > { %v834_v42 = vmul.f32 0.35355338, %v830_v41  ;;  %v1770_v43 = vpop.f32.mrb[3].mxu1 }
 0x28a   : > { %v835_v44 = vsel %vm757_vm2, %v834_v42, -inf }
 0x28b   : > { %836 = vmax.xlane.f32.xlu0 %v835_v44 }
 0x2fb   : > { %v994_v45 = vpop.f32.mrb[4].mxu0 }
 0x2fc   : > { %v998_v46 = vmul.f32 0.35355338, %v994_v45  ;;  %v1780_v47 = vpop.f32.mrb[5].mxu0 }
 0x2fe   : > { %v999_v48 = vsel %vm757_vm2, %v998_v46, -inf }
 0x2ff   : > { %1000 = vmax.xlane.f32.xlu1 %v999_v48  ;;  %v1163_v49 = vpop.f32.mrb[6].mxu0 }
 0x300   : > { %v1167_v50 = vmul.f32 0.35355338, %v1163_v49  ;;  %v1790_v51 = vpop.f32.mrb[7].mxu0 }
 0x302   : > { %v1168_v52 = vsel %vm757_vm2, %v1167_v50, -inf }
 0x303   : > { %1169 = vmax.xlane.f32.xlu0 %v1168_v52  ;;  %v1331_v53 = vpop.f32.mrb[8].mxu0 }
 0x304   : > { %v1335_v54 = vmul.f32 0.35355338, %v1331_v53  ;;  %v1800_v55 = vpop.f32.mrb[9].mxu0 }
 0x306   : > { %v1336_v56 = vsel %vm757_vm2, %v1335_v54, -inf }
 0x307   : > { %1337 = vmax.xlane.f32.xlu0 %v1336_v56 }
 0x310   : > { %1011 = vrot.lane.b32.xlu1 %v754_v39, %s2242_s11 }
 0x318   : > { %v837_v57 = vpop.xlane.xlu0 %836 }
 0x319   : > { %v838_v58 = vsub.f32 %v834_v42, %v837_v57 }
 0x31b   : > { %v839_v59 = vmul.f32 1.442695, %v838_v58 }
 0x31d   : > { %1928 = vpow2.f32 %v839_v59 }
 0x327   : > { %v1929_v60 = vpop.eup %1928 }
 0x328   : > { %v841_v61 = vsel %vm757_vm2, %v1929_v60, 0.0 }
 0x334   : > { %842 = vadd.xlane.f32.xlu1 %v841_v61 }
 0x38c   : > { %v1001_v62 = vpop.xlane.xlu1 %1000 }
 0x38d   : > { %v1002_v63 = vsub.f32 %v998_v46, %v1001_v62 }
 0x38f   : > { %v1003_v0 = vmul.f32 1.442695, %v1002_v63 }
 0x390   : > { %v1170_v2 = vpop.xlane.xlu0 %1169  ;;  %v1012_v14 = vpop.permute.xlu1 %1011 }
 0x391   : > { %1930 = vpow2.f32 %v1003_v0  ;;  %v1171_v3 = vsub.f32 %v1167_v50, %v1170_v2 }
 0x393   : > { %v1172_v4 = vmul.f32 1.442695, %v1171_v3 }
 0x394   : > { %v1338_v5 = vpop.xlane.xlu0 %1337 }
 0x395   : > { %1932 = vpow2.f32 %v1172_v4  ;;  %v1339_v6 = vsub.f32 %v1335_v54, %v1338_v5 }
 0x397   : > { %v1340_v7 = vmul.f32 1.442695, %v1339_v6 }
 0x399   : > { %1934 = vpow2.f32 %v1340_v7 }
 0x39b   : > { %v1931_v8 = vpop.eup %1930 }
 0x39c   : > { %v1005_v9 = vsel %vm757_vm2, %v1931_v8, 0.0 }
 0x39d   : > { %1006 = vadd.xlane.f32.xlu0 %v1005_v9 }
 0x39f   : > { %v1933_v10 = vpop.eup %1932 }
 0x3a0   : > { %v1174_v11 = vsel %vm757_vm2, %v1933_v10, 0.0 }
 0x3a1   : > { %1175 = vadd.xlane.f32.xlu1 %v1174_v11 }
 0x3a3   : > { %v1935_v12 = vpop.eup %1934 }
 0x3a4   : > { %v1342_v13 = vsel %vm757_vm2, %v1935_v12, 0.0 }
 0x3a5   : > { %1343 = vadd.xlane.f32.xlu0 %v1342_v13 }
 0x3b2   : > { %1347 = vrot.lane.b32.xlu1 %v754_v39, %s2243_s8 }
 0x3bb   : > { %1179 = vrot.lane.b32.xlu0 %v754_v39, %s2241_s10  ;;  %s2124_s10 = scalar_lea.vmem %s2123_s20, 1024 }
 0x3bc   : > { %p2126_p7 = scmp.lt.s32.totalorder %s2124_s10, %s2118_s30 }
 0x3be   : > { %p2127_p3 = por %p2126_p7, %p2125_p13 }
 0x3c0   : > { %p2128_p5 = pnand %p2127_p3, %p2121_p9 }
 0x3c1   : > { %v843_v15 = vpop.xlane.xlu1 %842 }
 0x3c2   : > { %1936 = vrcp.f32 %v843_v15 }
 0x3cc   : > { %v1937_v16 = vpop.eup %1936 }
 0x3cd   : > { %v845_v17 = vmul.f32 %v1937_v16, %v1929_v60 }
 0x3cf   : > { %919 = vst.msk [vmem:[%s2657_s29] sm:$0xff] %vm757_vm2, %v845_v17  ;;  %1774 = vmatmul.mubr.msk.f32.vlgmr.msra.gmra.mrb[4].mxu1 %vm757_vm2, %v845_v17 }
 0x3d0   : > { %1782 = vmatpush3.msra.mxu1 %v1012_v14  ;;  %1783 = vmatprep.mubr.msk.f32.mxu1 %vm2239_vm0, %v2240_v1 }
 0x3d1   : > { %1791 = vmatprep.subr.mxu1 %v2240_v1 }
 0x42a   : > { %v1007_v18 = vpop.xlane.xlu0 %1006 }
 0x42b   : > { %1938 = vrcp.f32 %v1007_v18 }
 0x42e   : > { %v1176_v19 = vpop.xlane.xlu1 %1175 }
 0x42f   : > { %1940 = vrcp.f32 %v1176_v19 }
 0x432   : > { %v1344_v20 = vpop.xlane.xlu0 %1343  ;;  %v1348_v26 = vpop.permute.xlu1 %1347 }
 0x433   : > { %1942 = vrcp.f32 %v1344_v20 }
 0x435   : > { %v1939_v21 = vpop.eup %1938 }
 0x436   : > { %v1009_v22 = vmul.f32 %v1939_v21, %v1931_v8  ;;  %v1180_v23 = vpop.permute.xlu0 %1179 }
 0x438   : > { %1685 = vst.msk [vmem:[%s2657_s29 + $0x8] sm:$0xff] %vm757_vm2, %v1009_v22  ;;  %1784 = vmatmul.mubr.msk.f32.vlgmr.msra.gmra.mrb[6].mxu1 %vm757_vm2, %v1009_v22 }
 0x439   : > { %v1941_v24 = vpop.eup %1940  ;;  %1792 = vmatpush3.msra.mxu1 %v1180_v23  ;;  %1793 = vmatprep.mubr.msk.f32.mxu1 %vm2239_vm0, %v2240_v1 }
 0x43a   : > { %v1178_v25 = vmul.f32 %v1941_v24, %v1933_v10  ;;  %1801 = vmatprep.subr.mxu1 %v2240_v1 }
 0x43c   : > { %1689 = vst.msk [vmem:[%s2657_s29 + $0x10] sm:$0xff] %vm757_vm2, %v1178_v25  ;;  %1794 = vmatmul.mubr.msk.f32.vlgmr.msra.gmra.mrb[8].mxu1 %vm757_vm2, %v1178_v25 }
 0x43d   : > { %v1943_v27 = vpop.eup %1942  ;;  %1802 = vmatpush3.msra.mxu1 %v1348_v26  ;;  %1803 = vmatprep.mubr.msk.f32.mxu1 %vm2239_vm0, %v2240_v1 }
 0x43e   : > { %v1346_v28 = vmul.f32 %v1943_v27, %v1935_v12 }
 0x440   : > { %1693 = vst.msk [vmem:[%s2657_s29 + $0x18] sm:$0xff] %vm757_vm2, %v1346_v28  ;;  %1804 = vmatmul.mubr.msk.f32.vlgmr.msra.gmra.mrb[10].mxu1 %vm757_vm2, %v1346_v28 }
 0x4a2   : > { %v915_v29 = vpop.f32.mrb[4].mxu1 }
 0x4a3   : > { %v1775_v30 = vpop.f32.mrb[5].mxu1 }
 0x50b   : > { %v1083_v31 = vpop.f32.mrb[6].mxu1 }
 0x50c   : > { %1426 = vrot.lane.b32.xlu1 %v1083_v31, %s2244_s24  ;;  %v1785_v32 = vpop.f32.mrb[7].mxu1 }
 0x50d   : > { %2131 = shalt.err (!%p2128_p5)
}
 0x50e   : > { %s2132_s11 = scalar_lea.hbm %s2685_s9, 512  ;;  %s2136_s22 = scalar_lea.hbm %s2840_s23, 1024 }
 0x50f   : > { %p2133_p2 = scmp.ne.s32.totalorder %s2685_s9, %s2132_s11  ;;  %p2137_p12 = scmp.lt.u32.totalorder %s2685_s9, %s2840_s23 }
 0x510   : > { %p2138_p1 = scmp.lt.u32.totalorder %s2136_s22, %s2132_s11  ;;  %p2140_p10 = scmp.lt.u32.totalorder %s2132_s11, %s2685_s9 }
 0x511   : > { %p2134_p8 = pnand %p2133_p2, %p2841_p0 }
 0x512   : > { %p2139_p6 = por %p2138_p1, %p2137_p12 }
 0x513   : > { %p2135_p11 = pneg %p2134_p8 }
 0x514   : > { %p2141_p4 = por %p2140_p10, %p2139_p6 }
 0x516   : > { %p2142_p9 = pnand %p2141_p4, %p2135_p11 }
 0x518   : > { %2145 = shalt.err (!%p2142_p9)
}
 0x519   : > { %s2246_s29 = smov 128   ;;  %v1251_v1 = vpop.f32.mrb[8].mxu1  ;;  %s2247_s1 = smov 16   ;;  %vm1438_vm3 = vcmask 130048   ;;  %vm1440_vm4 = vcmask 195584  }
 0x51a   : > { %1843 = dma.vmem_to_hbm [thread:$0]  (%p2841_p0), %s2687_s3, 512, %s2685_s9, %s1449_s19, %s2246_s29, %s2246_s29, %s2244_s24   ;;  %v1795_v33 = vpop.f32.mrb[9].mxu1 }
 0x51b   : > { %1430 = vrot.lane.b32.xlu0 %v1251_v1, %s2247_s1  ;;  %v1419_v34 = vpop.f32.mrb[10].mxu1  ;;  %s2248_s21 = smov 24   ;;  %s1696_s28 = sshll.u32 %s2326_s17, 7 }
 0x51c   : > { %1434 = vrot.lane.b32.xlu1 %v1419_v34, %s2248_s21  ;;  %v1805_v35 = vpop.f32.mrb[11].mxu1  ;;  %s493_s30 = scalar_lea.vmem [#allocation13], %s2568_s25  ;;  %s2842_s9 = sld [smem:[#allocation31_spill]] }
 0x51d   : > { %s1462_s26 = sshll.u32 %s493_s30, 4  ;;  %s1444_s17 = scalar_lea.sflag [#allocation4], %s2565_s12  ;;  %s2722_s26 = int_to_ptr.vmem [resolvable:$true] %s1462_s26 }
 0x51e   : > { %s2146_s25 = scalar_lea.vmem %s2722_s26, 128  ;;  %s2249_s20 = smov [#allocation13]  }
 0x51f   : > { %p2147_p13 = scmp.ne.s32.totalorder %s2722_s26, %s2146_s25  ;;  %s2150_s10 = sshll.u32 %s2249_s20, 4  ;;  %s2151_s10 = int_to_ptr.vmem [resolvable:$false] %s2150_s10 }
 0x520   : > { %s2152_s11 = scalar_lea.vmem %s2151_s10, 256  ;;  %p2153_p5 = scmp.lt.s32.totalorder %s2722_s26, %s2151_s10 }
 0x521   : > { %p2148_p7 = pnand %p2147_p13, %p2841_p0  ;;  %p2154_p2 = scmp.lt.s32.totalorder %s2152_s11, %s2146_s25 }
 0x522   : > { %s2720_s19 = scalar_lea.hbm %s2842_s9, %s1696_s28 }
 0x523   : > { %p2149_p3 = pneg %p2148_p7  ;;  %p2155_p8 = por %p2154_p2, %p2153_p5 }
 0x525   : > { %p2156_p11 = pnand %p2155_p8, %p2149_p3 }
 0x57e   : > { %v1427_v36 = vpop.permute.xlu1 %1426 }
 0x57f   : > { %v1437_v38 = vsel %vm757_vm2, %v915_v29, %v1427_v36 }
 0x58d   : > { %v1431_v37 = vpop.permute.xlu0 %1430 }
 0x58e   : > { %v1439_v39 = vsel %vm1438_vm3, %v1437_v38, %v1431_v37  ;;  %v1435_v40 = vpop.permute.xlu1 %1434 }
 0x58f   : > { %v1441_v41 = vsel %vm1440_vm4, %v1439_v39, %v1435_v40 }
 0x590   : > { %1442 = vst.msk [vmem:[%s493_s30] sm:$0xff] %vm515_vm1, %v1441_v41 }
 0x591   : > { %2159 = shalt.err (!%p2156_p11)
}
 0x592   : > { %s2160_s12 = scalar_lea.hbm %s2720_s19, 128  ;;  %s2164_s22 = scalar_lea.hbm %s2842_s9, 256 }
 0x593   : > { %p2161_p12 = scmp.ne.s32.totalorder %s2720_s19, %s2160_s12  ;;  %p2165_p10 = scmp.lt.u32.totalorder %s2720_s19, %s2842_s9 }
 0x594   : > { %p2166_p4 = scmp.lt.u32.totalorder %s2164_s22, %s2160_s12  ;;  %p2168_p13 = scmp.lt.u32.totalorder %s2160_s12, %s2720_s19 }
 0x595   : > { %p2162_p1 = pnand %p2161_p12, %p2841_p0 }
 0x596   : > { %p2167_p9 = por %p2166_p4, %p2165_p10 }
 0x597   : > { %p2163_p6 = pneg %p2162_p1 }
 0x598   : > { %p2169_p7 = por %p2168_p13, %p2167_p9 }
 0x59a   : > { %p2170_p3 = pnand %p2169_p7, %p2163_p6 }
 0x59c   : > { %2173 = shalt.err (!%p2170_p3)
}
 0x59d   : > { %1842 = dma.vmem_to_hbm [thread:$0]  (%p2841_p0), %s2722_s26, 128, %s2720_s19, %s1444_s17  }
 0x59e PF: > { %s2843_s29 = sld [smem:[#allocation22_spill]]  ;;  %s2844_s1 = sld [smem:[#allocation24_spill]] }
 0x59f   : > { %s2845_s21 = sld [smem:[#allocation23_spill]] }
 0x5a4   : > { %s1490_s28 = sand.u32 1, %s2843_s29   ;;  %p2846_p5 = scmp.ne.s32.totalorder %s2844_s1, 0 }
 0x5a5   : > { %p2847_p2 = scmp.ge.s32.totalorder %s2845_s21, 2  ;;  %s1491_s30 = scalar_lea.sflag [#allocation4], %s1490_s28 }
 0x5a7   : > { %p1867_p8 = pnand %p2847_p2, %p2846_p5 }
 0x5a9   : > { %2207 = dma.done.wait (!%p1867_p8), %s1491_s30, 128  }
 0x5aa   : > { %2209 = vsyncadd (!%p1867_p8), %s1491_s30, 4294967168  ;;  %s1500_s3 = scalar_lea.sflag [#allocation15], %s1490_s28 }
 0x5ab   : > { %2211 = dma.done.wait (!%p1867_p8), %s1500_s3, 512  }
 0x5ac   : > { %2213 = vsyncadd (!%p1867_p8), %s1500_s3, 4294966784  ;;  %s2848_s16 = sld [smem:[#allocation25_spill]]  ;;  %s2849_s27 = sld [smem:[#allocation26_spill]] }
 0x5ad   : > { %s2850_s13 = smov %s2220_s14  ;;  %s2851_s14 = smov %s2224_s15 }
 0x5b2   : > { %p32_p0 = scmp.ge.s32.totalorder %s2848_s16, 4   ;;  %s2852_s15 = smov %s2849_s27 }
 0x5b4   :  { %34 = sbr.rel (!%p32_p0) target bundleno = 17 (0x11), region = 157 }
 0x5bb   :  { %1505 = vsyncpa [#allocation3], 1 }
 0x5bc   :  { %1507 = vsyncpa [#allocation3 + $0x1], 1 }
 0x5bd   :  { %1508 = vsyncpa [#allocation6], 1 }
 0x5be   :  { %1510 = vsyncpa [#allocation6 + $0x1], 1 }
 0x5bf   :  { %1511 = vsyncpa [#allocation9], 1 }
 0x5c0   :  { %1512 = vsyncpa [#allocation12], 1 }
 0x5c1   :  { %1513 = vsyncpa [#allocation4], 1 }
 0x5c2   :  { %1515 = vsyncpa [#allocation4 + $0x1], 1 }
 0x5c3   :  { %1516 = vsyncpa [#allocation15], 1 }
 0x5c4   :  { %1518 = vsyncpa [#allocation15 + $0x1], 1 }

</bundles_post_ra>
